<compile_context>
chip_gen: v7x
topology: tpu7x:2x2x1
jax: 0.10.0
libtpu: 0.0.40
codegen_flags: <defaults>
</compile_context>

<pallas_src>
import functools

import jax
import jax.numpy as jnp
import numpy as np
from jax.experimental import pallas as pl
from jax.experimental.pallas import tpu as pltpu


# tap order: t = (dy + 1) * 3 + (dx + 1)  ==  ky * 3 + kx   (center tap: t == 4)
_OFFSETS = tuple((dy, dx) for dy in (-1, 0, 1) for dx in (-1, 0, 1))


# ----------------------------------------------------------------------------
# Fused Pallas kernel (one program per group of G folded batch images)
# ----------------------------------------------------------------------------
def _fused_kernel(x_ref, m_ref, w0_ref, w1_ref, w2_ref, o_ref, *, W,
                  compute_dtype):
    """Fused Network_Generator forward for one group of G images.

    x_ref  : (1, Cin, N)       N = G*H*W, channels-first, spatial flattened
    m_ref  : (9, N)            per-tap validity masks (0/1), within-image coords
    w*_ref : (Cout, 9*Cin+1)   packed weights; column = tap*Cin + cin, last = bias
    o_ref  : (1, 1, N)
    """
    cdt = compute_dtype
    N = x_ref.shape[-1]
    x_f32 = x_ref[0].astype(jnp.float32)                  # (Cin, N)
    ones = jnp.ones((1, N), cdt)                          # bias row for matmul

    # Load tap masks once; reused by all three convolutions (center needs none).
    masks = [None if t == 4 else m_ref[t:t + 1, :].astype(cdt)
             for t in range(9)]

    def conv3x3(inp, w_ref_):
        # Build the (9*cin + 1, N) im2col(+bias) patch matrix in registers:
        # each tap is a lane roll (XLU) of the flattened images with
        # out-of-bounds / cross-image positions zeroed by the precomputed mask.
        taps = []
        for t, (dy, dx) in enumerate(_OFFSETS):
            if t == 4:
                taps.append(inp)                          # center tap, always valid
            else:
                shift = (-(dy * W + dx)) % N
                taps.append(pltpu.roll(inp, shift, 1) * masks[t])
        taps.append(ones)                                 # folded bias
        patches = jnp.concatenate(taps, axis=0)           # (9*cin + 1, N)
        return jnp.dot(w_ref_[...], patches,
                       preferred_element_type=jnp.float32)  # (cout, N) f32

    s1 = conv3x3(x_f32.astype(cdt), w0_ref)               # stem
    # TODO(synk): Cell_encoder_1 / Cell_encoder_4 (OneModel) are not defined in
    # the provided source snippet; they are treated as identity here.
    h = conv3x3(s1.astype(cdt), w1_ref)                   # stem_out[0]
    r = conv3x3(h.astype(cdt), w2_ref)                    # stem_out[1]  (1, N)
    o_ref[0] = (x_f32[0:1, :] + jnp.tanh(r)).astype(o_ref.dtype)


# ----------------------------------------------------------------------------
# Host-side packing helpers
# ----------------------------------------------------------------------------
def _make_masks(H, W, G):
    """(9, G*H*W) 0/1 masks: within-image tap validity (zero padding)."""
    HW = H * W
    p = np.arange(HW)
    row, col = p // W, p % W
    m = np.empty((9, HW), np.float32)
    for t, (dy, dx) in enumerate(_OFFSETS):
        m[t] = (((row + dy) >= 0) & ((row + dy) < H) &
                ((col + dx) >= 0) & ((col + dx) < W)).astype(np.float32)
    return np.tile(m, (1, G))


def _pack_weight(w_hwio, b, dtype):
    """(3,3,Cin,Cout) HWIO + (Cout,) bias -> (Cout, 9*Cin + 1).

    Column index = tap*Cin + cin; the last column is the bias (contracted
    against an all-ones patch row).  Real PyTorch OIHW weights must first be
    permuted to HWIO: w_hwio = w_oihw.transpose(2, 3, 1, 0).
    """
    kh, kw, cin, cout = w_hwio.shape
    w = (w_hwio.reshape(kh * kw, cin, cout)
         .transpose(2, 0, 1)
         .reshape(cout, kh * kw * cin))
    return jnp.concatenate([w, b.reshape(cout, 1)], axis=1).astype(dtype)


# ----------------------------------------------------------------------------
# Wrapper
# ----------------------------------------------------------------------------
@functools.partial(jax.jit, static_argnames=("compute_dtype",))
def network_generator_forward(x_nchw, params, *, compute_dtype=jnp.float32):
    B, Cin, H, W = x_nchw.shape
    C = params["stem_w"].shape[-1]
    HW = H * W

    # Batch folding: G images per grid program along the lane (N) axis so every
    # MXU contraction sees N = G*H*W lanes; keep >=2 "parallel" programs when
    # possible so both v7x TensorCores are used (v5e/v6e: single TC, harmless).
    P = 2 if (B >= 2 and B % 2 == 0) else 1
    G = B // P
    N = G * HW

    # NCHW -> (P, Cin, G*HW): pure layout plumbing, done once in XLA.
    x_folded = (x_nchw.reshape(P, G, Cin, HW)
                .transpose(0, 2, 1, 3)
                .reshape(P, Cin, N))

    masks = jnp.asarray(_make_masks(H, W, G), compute_dtype)
    w0 = _pack_weight(params["stem_w"], params["stem_b"], compute_dtype)
    w1 = _pack_weight(params["out1_w"], params["out1_b"], compute_dtype)
    w2 = _pack_weight(params["out2_w"], params["out2_b"], compute_dtype)

    # Explicit VMEM budget (double-buffered I/O + live register values) with
    # generous headroom; tiny at these sizes, capped well under the 64 MiB v7x
    # physical ceiling.
    # TODO(synk): for very large H*W add a spatial grid axis with halo tiles.
    vmem_bytes = int(min(96 * 1024 * 1024,
                         max(32 * 1024 * 1024,
                             8 * (Cin + 2 * C + 9 * max(Cin, C) + 4) * N * 4)))

    kernel = functools.partial(_fused_kernel, W=W, compute_dtype=compute_dtype)
    out = pl.pallas_call(
        kernel,
        out_shape=jax.ShapeDtypeStruct((P, 1, N), x_nchw.dtype),
        grid=(P,),
        in_specs=[
            pl.BlockSpec((1, Cin, N), lambda i: (i, 0, 0)),
            pl.BlockSpec((9, N), lambda i: (0, 0)),
            pl.BlockSpec(w0.shape, lambda i: (0, 0)),
            pl.BlockSpec(w1.shape, lambda i: (0, 0)),
            pl.BlockSpec(w2.shape, lambda i: (0, 0)),
        ],
        out_specs=pl.BlockSpec((1, 1, N), lambda i: (i, 0, 0)),
        compiler_params=pltpu.CompilerParams(
            dimension_semantics=("parallel",),
            vmem_limit_bytes=vmem_bytes),
    )(x_folded, masks, w0, w1, w2)

    # (P, 1, G*HW) is already batch-major / pixel-minor -> free reshape.
    return out.reshape(B, 1, H, W)


# ----------------------------------------------------------------------------
# Parameters (deterministic, PyTorch-default-style uniform init, HWIO layout)
# ----------------------------------------------------------------------------
def init_params(key, C):
    def conv_init(k, cin, cout):
        kw, kb = jax.random.split(k)
        bound = 1.0 / jnp.sqrt(cin * 9.0)
        w = jax.random.uniform(kw, (3, 3, cin, cout), jnp.float32,
                               -bound, bound)
        b = jax.random.uniform(kb, (cout,), jnp.float32, -bound, bound)
        return w, b

    k0, k1, k2 = jax.random.split(key, 3)
    stem_w, stem_b = conv_init(k0, 2, C)     # nn.Conv2d(2, C, 3)
    out1_w, out1_b = conv_init(k1, C, C)     # nn.Conv2d(C, C, 3)
    out2_w, out2_b = conv_init(k2, C, 1)     # nn.Conv2d(C, 1, 3)
    return dict(stem_w=stem_w, stem_b=stem_b,
                out1_w=out1_w, out1_b=out1_b,
                out2_w=out2_w, out2_b=out2_b)


# ----------------------------------------------------------------------------
# Pure-JAX reference (numerical check)
# ----------------------------------------------------------------------------
def reference_forward(x_nchw, params):
    dn = ("NCHW", "HWIO", "NCHW")

    def conv(x, w, b):
        y = jax.lax.conv_general_dilated(
            x, w, window_strides=(1, 1), padding="SAME",
            dimension_numbers=dn, precision=jax.lax.Precision.HIGHEST)
        return y + b.reshape(1, -1, 1, 1)

    s1 = conv(x_nchw, params["stem_w"], params["stem_b"])
    h = conv(s1, params["out1_w"], params["out1_b"])
    r = conv(h, params["out2_w"], params["out2_b"])
    return x_nchw[:, 0:1, :, :] + jnp.tanh(r)


if __name__ == "__main__":
    B, C_in, C, H, W = 4, 2, 4, 16, 16
    key = jax.random.PRNGKey(0)
    kx, kp = jax.random.split(key)
    x = jax.random.normal(kx, (B, C_in, H, W), jnp.float32)   # NCHW like torch
    params = init_params(kp, C)

    ref = jax.block_until_ready(reference_forward(x, params))

    # f32 operand path (default; best for v5e) -- tight check against the
    # HIGHEST-precision XLA reference.
    out = network_generator_forward(x, params)
    jax.block_until_ready(out)
    assert out.shape == (B, 1, H, W), out.shape
    assert out.dtype == jnp.float32
    np.testing.assert_allclose(np.asarray(out), np.asarray(ref),
                               rtol=1e-4, atol=1e-4)

    # bf16 operand path (recommended on v6e / v7x): f32 MXU accumulation,
    # tanh + residual stay f32.  Tolerance matches bf16 operand rounding.
    out_bf16 = network_generator_forward(x, params,
                                         compute_dtype=jnp.bfloat16)
    jax.block_until_ready(out_bf16)
    assert out_bf16.shape == (B, 1, H, W)
    np.testing.assert_allclose(np.asarray(out_bf16), np.asarray(ref),
                               rtol=2e-2, atol=2e-2)

    print("KERNEL_OK")
</pallas_src>

<mosaic_0001>
module attributes {stable_mosaic.version = 11 : i64} {
  func.func @_fused_kernel(%arg0: i32, %arg1: memref<1x2x512xf32, #tpu.memory_space<vmem>>, %arg2: memref<9x512xf32, #tpu.memory_space<vmem>>, %arg3: memref<4x19xf32, #tpu.memory_space<vmem>>, %arg4: memref<4x37xf32, #tpu.memory_space<vmem>>, %arg5: memref<1x37xf32, #tpu.memory_space<vmem>>, %arg6: memref<1x1x512xf32, #tpu.memory_space<vmem>>) attributes {dimension_semantics = [#tpu.dimension_semantics<parallel>], iteration_bounds = array<i64: 2>, scalar_prefetch = 0 : i64, scratch_operands = 0 : i64, tpu.core_type = #tpu.core_type<tc>, window_params = [{transform_indices = @transform_0, window_bounds = array<i64: 1, 2, 512>}, {pipeline_mode = #tpu.pipeline_mode<synchronous>, transform_indices = @transform_1, window_bounds = array<i64: 9, 512>}, {pipeline_mode = #tpu.pipeline_mode<synchronous>, transform_indices = @transform_2, window_bounds = array<i64: 4, 19>}, {pipeline_mode = #tpu.pipeline_mode<synchronous>, transform_indices = @transform_3, window_bounds = array<i64: 4, 37>}, {pipeline_mode = #tpu.pipeline_mode<synchronous>, transform_indices = @transform_4, window_bounds = array<i64: 1, 37>}, {transform_indices = @transform_5, window_bounds = array<i64: 1, 1, 512>}]} {
    %c0 = arith.constant 0 : index
    %c0_0 = arith.constant 0 : index
    %c0_1 = arith.constant 0 : index
    %0 = vector.load %arg1[%c0, %c0_0, %c0_1] : memref<1x2x512xf32, #tpu.memory_space<vmem>>, vector<1x2x512xf32>
    %1 = vector.shape_cast %0 : vector<1x2x512xf32> to vector<2x512xf32>
    %cst = arith.constant 1.000000e+00 : f32
    %2 = vector.broadcast %cst : f32 to vector<1x512xf32>
    %c0_2 = arith.constant 0 : index
    %c0_3 = arith.constant 0 : index
    %3 = vector.load %arg2[%c0_2, %c0_3] : memref<9x512xf32, #tpu.memory_space<vmem>>, vector<1x512xf32>
    %c1 = arith.constant 1 : index
    %c0_4 = arith.constant 0 : index
    %4 = vector.load %arg2[%c1, %c0_4] : memref<9x512xf32, #tpu.memory_space<vmem>>, vector<1x512xf32>
    %c2 = arith.constant 2 : index
    %c0_5 = arith.constant 0 : index
    %5 = vector.load %arg2[%c2, %c0_5] : memref<9x512xf32, #tpu.memory_space<vmem>>, vector<1x512xf32>
    %c3 = arith.constant 3 : index
    %c0_6 = arith.constant 0 : index
    %6 = vector.load %arg2[%c3, %c0_6] : memref<9x512xf32, #tpu.memory_space<vmem>>, vector<1x512xf32>
    %c5 = arith.constant 5 : index
    %c0_7 = arith.constant 0 : index
    %7 = vector.load %arg2[%c5, %c0_7] : memref<9x512xf32, #tpu.memory_space<vmem>>, vector<1x512xf32>
    %c6 = arith.constant 6 : index
    %c0_8 = arith.constant 0 : index
    %8 = vector.load %arg2[%c6, %c0_8] : memref<9x512xf32, #tpu.memory_space<vmem>>, vector<1x512xf32>
    %c7 = arith.constant 7 : index
    %c0_9 = arith.constant 0 : index
    %9 = vector.load %arg2[%c7, %c0_9] : memref<9x512xf32, #tpu.memory_space<vmem>>, vector<1x512xf32>
    %c8 = arith.constant 8 : index
    %c0_10 = arith.constant 0 : index
    %10 = vector.load %arg2[%c8, %c0_10] : memref<9x512xf32, #tpu.memory_space<vmem>>, vector<1x512xf32>
    %c17_i32 = arith.constant 17 : i32
    %11 = tpu.dynamic_rotate %1 by %c17_i32 dim 1 : vector<2x512xf32>, i32 -> vector<2x512xf32>
    %12 = vector.broadcast %3 : vector<1x512xf32> to vector<2x512xf32>
    %13 = arith.mulf %11, %12 : vector<2x512xf32>
    %c16_i32 = arith.constant 16 : i32
    %14 = tpu.dynamic_rotate %1 by %c16_i32 dim 1 : vector<2x512xf32>, i32 -> vector<2x512xf32>
    %15 = vector.broadcast %4 : vector<1x512xf32> to vector<2x512xf32>
    %16 = arith.mulf %14, %15 : vector<2x512xf32>
    %c15_i32 = arith.constant 15 : i32
    %17 = tpu.dynamic_rotate %1 by %c15_i32 dim 1 : vector<2x512xf32>, i32 -> vector<2x512xf32>
    %18 = vector.broadcast %5 : vector<1x512xf32> to vector<2x512xf32>
    %19 = arith.mulf %17, %18 : vector<2x512xf32>
    %c1_i32 = arith.constant 1 : i32
    %20 = tpu.dynamic_rotate %1 by %c1_i32 dim 1 : vector<2x512xf32>, i32 -> vector<2x512xf32>
    %21 = vector.broadcast %6 : vector<1x512xf32> to vector<2x512xf32>
    %22 = arith.mulf %20, %21 : vector<2x512xf32>
    %c511_i32 = arith.constant 511 : i32
    %23 = tpu.dynamic_rotate %1 by %c511_i32 dim 1 : vector<2x512xf32>, i32 -> vector<2x512xf32>
    %24 = vector.broadcast %7 : vector<1x512xf32> to vector<2x512xf32>
    %25 = arith.mulf %23, %24 : vector<2x512xf32>
    %c497_i32 = arith.constant 497 : i32
    %26 = tpu.dynamic_rotate %1 by %c497_i32 dim 1 : vector<2x512xf32>, i32 -> vector<2x512xf32>
    %27 = vector.broadcast %8 : vector<1x512xf32> to vector<2x512xf32>
    %28 = arith.mulf %26, %27 : vector<2x512xf32>
    %c496_i32 = arith.constant 496 : i32
    %29 = tpu.dynamic_rotate %1 by %c496_i32 dim 1 : vector<2x512xf32>, i32 -> vector<2x512xf32>
    %30 = vector.broadcast %9 : vector<1x512xf32> to vector<2x512xf32>
    %31 = arith.mulf %29, %30 : vector<2x512xf32>
    %c495_i32 = arith.constant 495 : i32
    %32 = tpu.dynamic_rotate %1 by %c495_i32 dim 1 : vector<2x512xf32>, i32 -> vector<2x512xf32>
    %33 = vector.broadcast %10 : vector<1x512xf32> to vector<2x512xf32>
    %34 = arith.mulf %32, %33 : vector<2x512xf32>
    %35 = tpu.concatenate %13, %16, %19, %22, %1, %25, %28, %31, %34, %2 in 0 : vector<2x512xf32>, vector<2x512xf32>, vector<2x512xf32>, vector<2x512xf32>, vector<2x512xf32>, vector<2x512xf32>, vector<2x512xf32>, vector<2x512xf32>, vector<2x512xf32>, vector<1x512xf32> -> vector<19x512xf32>
    %c0_11 = arith.constant 0 : index
    %c0_12 = arith.constant 0 : index
    %36 = vector.load %arg3[%c0_11, %c0_12] : memref<4x19xf32, #tpu.memory_space<vmem>>, vector<4x19xf32>
    %cst_13 = arith.constant dense<0.000000e+00> : vector<4x512xf32>
    %37 = tpu.matmul %36, %35, %cst_13 {dimension_numbers = #tpu.dot_dimension_numbers<[1], [0], [0], [1], [0, 0, 1, 1], [], []>} : vector<4x19xf32>, vector<19x512xf32>, vector<4x512xf32> -> vector<4x512xf32>
    %c17_i32_14 = arith.constant 17 : i32
    %38 = tpu.dynamic_rotate %37 by %c17_i32_14 dim 1 : vector<4x512xf32>, i32 -> vector<4x512xf32>
    %39 = vector.broadcast %3 : vector<1x512xf32> to vector<4x512xf32>
    %40 = arith.mulf %38, %39 : vector<4x512xf32>
    %c16_i32_15 = arith.constant 16 : i32
    %41 = tpu.dynamic_rotate %37 by %c16_i32_15 dim 1 : vector<4x512xf32>, i32 -> vector<4x512xf32>
    %42 = vector.broadcast %4 : vector<1x512xf32> to vector<4x512xf32>
    %43 = arith.mulf %41, %42 : vector<4x512xf32>
    %c15_i32_16 = arith.constant 15 : i32
    %44 = tpu.dynamic_rotate %37 by %c15_i32_16 dim 1 : vector<4x512xf32>, i32 -> vector<4x512xf32>
    %45 = vector.broadcast %5 : vector<1x512xf32> to vector<4x512xf32>
    %46 = arith.mulf %44, %45 : vector<4x512xf32>
    %c1_i32_17 = arith.constant 1 : i32
    %47 = tpu.dynamic_rotate %37 by %c1_i32_17 dim 1 : vector<4x512xf32>, i32 -> vector<4x512xf32>
    %48 = vector.broadcast %6 : vector<1x512xf32> to vector<4x512xf32>
    %49 = arith.mulf %47, %48 : vector<4x512xf32>
    %c511_i32_18 = arith.constant 511 : i32
    %50 = tpu.dynamic_rotate %37 by %c511_i32_18 dim 1 : vector<4x512xf32>, i32 -> vector<4x512xf32>
    %51 = vector.broadcast %7 : vector<1x512xf32> to vector<4x512xf32>
    %52 = arith.mulf %50, %51 : vector<4x512xf32>
    %c497_i32_19 = arith.constant 497 : i32
    %53 = tpu.dynamic_rotate %37 by %c497_i32_19 dim 1 : vector<4x512xf32>, i32 -> vector<4x512xf32>
    %54 = vector.broadcast %8 : vector<1x512xf32> to vector<4x512xf32>
    %55 = arith.mulf %53, %54 : vector<4x512xf32>
    %c496_i32_20 = arith.constant 496 : i32
    %56 = tpu.dynamic_rotate %37 by %c496_i32_20 dim 1 : vector<4x512xf32>, i32 -> vector<4x512xf32>
    %57 = vector.broadcast %9 : vector<1x512xf32> to vector<4x512xf32>
    %58 = arith.mulf %56, %57 : vector<4x512xf32>
    %c495_i32_21 = arith.constant 495 : i32
    %59 = tpu.dynamic_rotate %37 by %c495_i32_21 dim 1 : vector<4x512xf32>, i32 -> vector<4x512xf32>
    %60 = vector.broadcast %10 : vector<1x512xf32> to vector<4x512xf32>
    %61 = arith.mulf %59, %60 : vector<4x512xf32>
    %62 = tpu.concatenate %40, %43, %46, %49, %37, %52, %55, %58, %61, %2 in 0 : vector<4x512xf32>, vector<4x512xf32>, vector<4x512xf32>, vector<4x512xf32>, vector<4x512xf32>, vector<4x512xf32>, vector<4x512xf32>, vector<4x512xf32>, vector<4x512xf32>, vector<1x512xf32> -> vector<37x512xf32>
    %c0_22 = arith.constant 0 : index
    %c0_23 = arith.constant 0 : index
    %63 = vector.load %arg4[%c0_22, %c0_23] : memref<4x37xf32, #tpu.memory_space<vmem>>, vector<4x37xf32>
    %cst_24 = arith.constant dense<0.000000e+00> : vector<4x512xf32>
    %64 = tpu.matmul %63, %62, %cst_24 {dimension_numbers = #tpu.dot_dimension_numbers<[1], [0], [0], [1], [0, 0, 1, 1], [], []>} : vector<4x37xf32>, vector<37x512xf32>, vector<4x512xf32> -> vector<4x512xf32>
    %c17_i32_25 = arith.constant 17 : i32
    %65 = tpu.dynamic_rotate %64 by %c17_i32_25 dim 1 : vector<4x512xf32>, i32 -> vector<4x512xf32>
    %66 = vector.broadcast %3 : vector<1x512xf32> to vector<4x512xf32>
    %67 = arith.mulf %65, %66 : vector<4x512xf32>
    %c16_i32_26 = arith.constant 16 : i32
    %68 = tpu.dynamic_rotate %64 by %c16_i32_26 dim 1 : vector<4x512xf32>, i32 -> vector<4x512xf32>
    %69 = vector.broadcast %4 : vector<1x512xf32> to vector<4x512xf32>
    %70 = arith.mulf %68, %69 : vector<4x512xf32>
    %c15_i32_27 = arith.constant 15 : i32
    %71 = tpu.dynamic_rotate %64 by %c15_i32_27 dim 1 : vector<4x512xf32>, i32 -> vector<4x512xf32>
    %72 = vector.broadcast %5 : vector<1x512xf32> to vector<4x512xf32>
    %73 = arith.mulf %71, %72 : vector<4x512xf32>
    %c1_i32_28 = arith.constant 1 : i32
    %74 = tpu.dynamic_rotate %64 by %c1_i32_28 dim 1 : vector<4x512xf32>, i32 -> vector<4x512xf32>
    %75 = vector.broadcast %6 : vector<1x512xf32> to vector<4x512xf32>
    %76 = arith.mulf %74, %75 : vector<4x512xf32>
    %c511_i32_29 = arith.constant 511 : i32
    %77 = tpu.dynamic_rotate %64 by %c511_i32_29 dim 1 : vector<4x512xf32>, i32 -> vector<4x512xf32>
    %78 = vector.broadcast %7 : vector<1x512xf32> to vector<4x512xf32>
    %79 = arith.mulf %77, %78 : vector<4x512xf32>
    %c497_i32_30 = arith.constant 497 : i32
    %80 = tpu.dynamic_rotate %64 by %c497_i32_30 dim 1 : vector<4x512xf32>, i32 -> vector<4x512xf32>
    %81 = vector.broadcast %8 : vector<1x512xf32> to vector<4x512xf32>
    %82 = arith.mulf %80, %81 : vector<4x512xf32>
    %c496_i32_31 = arith.constant 496 : i32
    %83 = tpu.dynamic_rotate %64 by %c496_i32_31 dim 1 : vector<4x512xf32>, i32 -> vector<4x512xf32>
    %84 = vector.broadcast %9 : vector<1x512xf32> to vector<4x512xf32>
    %85 = arith.mulf %83, %84 : vector<4x512xf32>
    %c495_i32_32 = arith.constant 495 : i32
    %86 = tpu.dynamic_rotate %64 by %c495_i32_32 dim 1 : vector<4x512xf32>, i32 -> vector<4x512xf32>
    %87 = vector.broadcast %10 : vector<1x512xf32> to vector<4x512xf32>
    %88 = arith.mulf %86, %87 : vector<4x512xf32>
    %89 = tpu.concatenate %67, %70, %73, %76, %64, %79, %82, %85, %88, %2 in 0 : vector<4x512xf32>, vector<4x512xf32>, vector<4x512xf32>, vector<4x512xf32>, vector<4x512xf32>, vector<4x512xf32>, vector<4x512xf32>, vector<4x512xf32>, vector<4x512xf32>, vector<1x512xf32> -> vector<37x512xf32>
    %c0_33 = arith.constant 0 : index
    %c0_34 = arith.constant 0 : index
    %90 = vector.load %arg5[%c0_33, %c0_34] : memref<1x37xf32, #tpu.memory_space<vmem>>, vector<1x37xf32>
    %cst_35 = arith.constant dense<0.000000e+00> : vector<1x512xf32>
    %91 = tpu.matmul %90, %89, %cst_35 {dimension_numbers = #tpu.dot_dimension_numbers<[1], [0], [0], [1], [0, 0, 1, 1], [], []>} : vector<1x37xf32>, vector<37x512xf32>, vector<1x512xf32> -> vector<1x512xf32>
    %92 = vector.extract_strided_slice %1 {offsets = [0, 0], sizes = [1, 512], strides = [1, 1]} : vector<2x512xf32> to vector<1x512xf32>
    %93 = math.tanh %91 : vector<1x512xf32>
    %94 = arith.addf %92, %93 : vector<1x512xf32>
    %c0_36 = arith.constant 0 : index
    %c0_37 = arith.constant 0 : index
    %c0_38 = arith.constant 0 : index
    %95 = vector.load %arg6[%c0_36, %c0_37, %c0_38] : memref<1x1x512xf32, #tpu.memory_space<vmem>>, vector<1x1x512xf32>
    %96 = vector.shape_cast %95 : vector<1x1x512xf32> to vector<1x512xf32>
    %97 = vector.shape_cast %94 : vector<1x512xf32> to vector<1x1x512xf32>
    tpu.vector_store %arg6[%c0_36, %c0_37, %c0_38], %97 {strides = array<i32>} : memref<1x1x512xf32, #tpu.memory_space<vmem>>, vector<1x1x512xf32>,
    return
  }
  func.func @transform_0(%arg0: i32) -> (i32, i32, i32) {
    %c0_i32 = arith.constant 0 : i32
    %c0_i32_0 = arith.constant 0 : i32
    %c0_i32_1 = arith.constant 0 : i32
    return %arg0, %c0_i32, %c0_i32_0 : i32, i32, i32
  }
  func.func @transform_1(%arg0: i32) -> (i32, i32) {
    %c0_i32 = arith.constant 0 : i32
    %c0_i32_0 = arith.constant 0 : i32
    %c0_i32_1 = arith.constant 0 : i32
    return %c0_i32, %c0_i32_0 : i32, i32
  }
  func.func @transform_2(%arg0: i32) -> (i32, i32) {
    %c0_i32 = arith.constant 0 : i32
    %c0_i32_0 = arith.constant 0 : i32
    %c0_i32_1 = arith.constant 0 : i32
    return %c0_i32, %c0_i32_0 : i32, i32
  }
  func.func @transform_3(%arg0: i32) -> (i32, i32) {
    %c0_i32 = arith.constant 0 : i32
    %c0_i32_0 = arith.constant 0 : i32
    %c0_i32_1 = arith.constant 0 : i32
    return %c0_i32, %c0_i32_0 : i32, i32
  }
  func.func @transform_4(%arg0: i32) -> (i32, i32) {
    %c0_i32 = arith.constant 0 : i32
    %c0_i32_0 = arith.constant 0 : i32
    %c0_i32_1 = arith.constant 0 : i32
    return %c0_i32, %c0_i32_0 : i32, i32
  }
  func.func @transform_5(%arg0: i32) -> (i32, i32, i32) {
    %c0_i32 = arith.constant 0 : i32
    %c0_i32_0 = arith.constant 0 : i32
    %c0_i32_1 = arith.constant 0 : i32
    return %arg0, %c0_i32, %c0_i32_0 : i32, i32, i32
  }
}

</mosaic_0001>

<bundles_post_ra>
// kernel: network_generator_forward.1
= control target key start
LH: loop header
LB: loop body
LE: loop exit
PB: predicated region body
PF: predicated region fallthrough
CT: control target
= control target key end

     0   :  { %s1788_s18 = smov 0   ;;  %s2687_s0 = inlined_call_operand.vmem [shape: f32[2,2,512], index: 0, kind: input, shape index: {}]   ;;  %s2688_s1 = inlined_call_operand.vmem [shape: f32[9,512], index: 1, kind: input, shape index: {}]   ;;  %s2689_s2 = inlined_call_operand.vmem [shape: f32[4,19], index: 2, kind: input, shape index: {}]   ;;  %s2690_s3 = inlined_call_operand.vmem [shape: f32[4,37], index: 3, kind: input, shape index: {}]   ;;  %s2691_s4 = inlined_call_operand.vmem [shape: f32[1,37], index: 4, kind: input, shape index: {}]   ;;  %s2692_s5 = inlined_call_operand.vmem [shape: f32[2,1,512], index: 5, kind: output, shape index: {}]  }
   0x1 LB: > { %s1634_s19 = sadd.s32 4294967295, %s1745_s18   ;;  %p1638_p0 = scmp.ge.s32.totalorder %s1745_s18, 1  ;;  %s1745_s18 = sphi %s1788_s18, %s15_s18  }
   0x2   : > { %p187_p1 = scmp.lt.s32.totalorder %s1745_s18, 3 }
   0x4   : > { %p188_p2 = pnand %p1638_p0, %p187_p1 }
   0x6   : > { %191 = sbr.rel (%p188_p2) target bundleno = 1226 (0x4ca), region = 40 }
   0xd   : > { %p214_p3 = scmp.lt.s32.totalorder %s1634_s19, 1  ;;  %v2693_v0 = vlaneseq  ;;  %v1747_v1 = vmov 1983009808   ;;  %s1748_s24 = smov 16   ;;  %v2694_v12 = vmov 0.0   ;;  %vm639_vm4 = vcmask 1041408  }
   0xe   : > { %v242_v2 = vunpack.c.l.s4 %v1747_v1  ;;  %s1749_s25 = smov 127   ;;  %s1750_s26 = smov 15   ;;  %752 = vmatprep.mubr.f32.mxu0 %v2694_v12  ;;  %823 = vmatprep.mubr.f32.mxu1 %v2694_v12  ;;  %v1645_v26 = vld [vmem:[%s2688_s1 + $0x5] ss:$8 sm:$0xf]  ;;  %vm644_vm7 = vcmask 1043456  }
   0xf   : > { %s2736_s19 = smov (!%p214_p3, %s1634_s19), 1  ;;  %v1799_v3 = vshrl.u32 %v2693_v0, 7  ;;  %s1751_s27 = smov 113   ;;  %v1906_v24 = vand.u32 127, %v2693_v0  ;;  %vm649_vm9 = vcmask 1045504   ;;  %vm675_vm11 = vcmask 1042432  }
  0x10   : > { %v243_v4 = vunpack.c.0.s8 %v242_v2  ;;  %s1669_s20 = sshll.u32 %s2736_s19, 3  ;;  %s1752_s28 = smov 17   ;;  %v1642_v31 = vld [vmem:[%s2688_s1 + $0x1] ss:$8 sm:$0xf]  ;;  %vm671_vm12 = vcmask 154624  }
  0x11   : > { %2712 = vst [vmem:[#allocation2_spill] sm:$0xff] %v1799_v3  ;;  %s1805_s23 = scalar_lea.vmem %s2687_s0, %s1669_s20  ;;  %s1753_s29 = smov 1   ;;  %v1909_v25 = vsub.s32 0, %v1799_v3  ;;  %v1915_v27 = vsub.s32 1, %v1799_v3  ;;  %v1918_v28 = vsub.s32 2, %v1799_v3  ;;  %v1921_v29 = vsub.s32 3, %v1799_v3 }
  0x12   : > { %v1808_v5 = vsub.s32 %v243_v4, %v1799_v3  ;;  %v223_v6 = vld [vmem:[%s1805_s23] sm:$0xff]  ;;  %s1754_s30 = smov 112   ;;  %s1756_s6 = smov 111   ;;  %vm423_vm0 = vcmp.lt.s32.totalorder %v1906_v24, 127  ;;  %vm309_vm1 = vcmp.lt.s32.totalorder %v1906_v24, 16  ;;  %vm347_vm2 = vcmp.lt.s32.totalorder %v1906_v24, 15 }
  0x13   : > { %v240_v8 = vcombine.high %v223_v6, %v223_v6  ;;  %v1932_v33 = vrot.slane %v1645_v26, %v1909_v25  ;;  %v1643_v34 = vld [vmem:[%s2688_s1 + $0x2] ss:$8 sm:$0xf]  ;;  %v1939_v35 = vrot.slane %v1642_v31, %v1915_v27  ;;  %v1942_v36 = vrot.slane %v1642_v31, %v1918_v28  ;;  %v1646_v39 = vld [vmem:[%s2688_s1 + $0x6] ss:$8 sm:$0xf] }
  0x14   : > { %2713 = vst [vmem:[#allocation3_spill] sm:$0xff] %v1808_v5  ;;  %v1812_v7 = vrot.slane %v223_v6, %v1808_v5  ;;  %v1945_v37 = vrot.slane %v1642_v31, %v1909_v25  ;;  %v1948_v38 = vrot.slane %v1642_v31, %v1921_v29  ;;  %v1956_v41 = vrot.slane %v1645_v26, %v1915_v27  ;;  %v224_v44 = vld [vmem:[%s2688_s1] ss:$8 sm:$0xf] }
  0x15   : > { %v1817_v9 = vrot.slane %v240_v8, %v1808_v5  ;;  %2714 = vst [vmem:[#allocation4_spill] sm:$0xff] %v1932_v33  ;;  %v1959_v42 = vrot.slane %v1645_v26, %v1918_v28  ;;  %v1962_v43 = vrot.slane %v1645_v26, %v1921_v29  ;;  %v1969_v45 = vrot.slane %v1643_v34, %v1915_v27  ;;  %v1644_v50 = vld [vmem:[%s2688_s1 + $0x3] ss:$8 sm:$0xf] }
  0x16   : > { %301 = vrot.lane.b32.xlu0 %v1812_v7, %s1748_s24  ;;  %v1823_v10 = vcombine.high %v1812_v7, %v1812_v7  ;;  %2715 = vst [vmem:[#allocation5_spill] sm:$0xff] %v1956_v41  ;;  %v1972_v46 = vrot.slane %v1643_v34, %v1918_v28  ;;  %v1975_v47 = vrot.slane %v1643_v34, %v1909_v25  ;;  %vm461_vm3 = vcmp.lt.s32.totalorder %v1906_v24, 113  ;;  %v1647_v63 = vld [vmem:[%s2688_s1 + $0x7] ss:$8 sm:$0xf] }
  0x17   : > { %305 = vrot.lane.b32.xlu1 %v1817_v9, %s1748_s24  ;;  %v1831_v11 = vcombine.high %v1817_v9, %v1817_v9  ;;  %2716 = vst [vmem:[#allocation6_spill] sm:$0xff] %v1959_v42  ;;  %2717 = vst [vmem:[#allocation7_spill] sm:$0xff] %v1962_v43  ;;  %v1978_v48 = vrot.slane %v1643_v34, %v1921_v29  ;;  %v1987_v51 = vrot.slane %v1646_v39, %v1909_v25  ;;  %v1648_v34 = vld [vmem:[%s2688_s1 + $0x20] ss:$8 sm:$0xf]  ;;  %vm1031_vm13 = vcmask 1044480  }
  0x18   : > { %2718 = vst [vmem:[#allocation8_spill] sm:$0xff] %v1975_v47  ;;  %v1990_v52 = vrot.slane %v1646_v39, %v1915_v27  ;;  %v1993_v53 = vrot.slane %v1646_v39, %v1918_v28  ;;  %v1999_v55 = vrot.slane %v1646_v39, %v1921_v29  ;;  %v2002_v57 = vrot.slane %v224_v44, %v1915_v27 }
  0x19   : > { %2719 = vst [vmem:[#allocation9_spill] sm:$0xff] %v1978_v48  ;;  %v2005_v58 = vrot.slane %v224_v44, %v1918_v28  ;;  %v2011_v60 = vrot.slane %v224_v44, %v1909_v25  ;;  %v2014_v61 = vrot.slane %v224_v44, %v1921_v29  ;;  %v2017_v62 = vrot.slane %v1644_v50, %v1915_v27 }
  0x1a   : > { %415 = vrot.lane.b32.xlu0 %v1812_v7, %s1749_s25  ;;  %2720 = vst [vmem:[#allocation10_spill] sm:$0xff] %v1990_v52  ;;  %vm271_vm5 = vcmp.lt.s32.totalorder %v1906_v24, 17  ;;  %v2031_v6 = vrot.slane %v1644_v50, %v1918_v28  ;;  %v2034_v8 = vrot.slane %v1644_v50, %v1909_v25  ;;  %v2058_v0 = vrot.slane %v1647_v63, %v1918_v28 }
  0x1b   : > { %417 = vrot.lane.b32.xlu1 %v1823_v10, %s1749_s25  ;;  %vm385_vm6 = vcmp.lt.s32.totalorder %v1906_v24, 1  ;;  %vm499_vm8 = vcmp.lt.s32.totalorder %v1906_v24, 112  ;;  %vm537_vm10 = vcmp.lt.s32.totalorder %v1906_v24, 111  ;;  %vm1027_vm14 = vcmask 302080  }
  0x1e   : > { %303 = vrot.lane.b32.xlu0 %v1823_v10, %s1748_s24 }
  0x1f   : > { %307 = vrot.lane.b32.xlu1 %v1831_v11, %s1748_s24 }
  0x22   : > { %419 = vrot.lane.b32.xlu0 %v1817_v9, %s1749_s25 }
  0x23   : > { %421 = vrot.lane.b32.xlu1 %v1831_v11, %s1749_s25 }
  0x26   : > { %339 = vrot.lane.b32.xlu0 %v1812_v7, %s1750_s26 }
  0x27   : > { %341 = vrot.lane.b32.xlu1 %v1823_v10, %s1750_s26 }
  0x2a   : > { %343 = vrot.lane.b32.xlu0 %v1817_v9, %s1750_s26 }
  0x2b   : > { %345 = vrot.lane.b32.xlu1 %v1831_v11, %s1750_s26 }
  0x2e   : > { %453 = vrot.lane.b32.xlu0 %v1812_v7, %s1751_s27 }
  0x2f   : > { %455 = vrot.lane.b32.xlu1 %v1823_v10, %s1751_s27 }
  0x32   : > { %457 = vrot.lane.b32.xlu0 %v1817_v9, %s1751_s27 }
  0x33   : > { %459 = vrot.lane.b32.xlu1 %v1831_v11, %s1751_s27 }
  0x36   : > { %261 = vrot.lane.b32.xlu0 %v1812_v7, %s1752_s28 }
  0x37   : > { %263 = vrot.lane.b32.xlu1 %v1823_v10, %s1752_s28 }
  0x3a   : > { %265 = vrot.lane.b32.xlu0 %v1817_v9, %s1752_s28 }
  0x3b   : > { %267 = vrot.lane.b32.xlu1 %v1831_v11, %s1752_s28 }
  0x3e   : > { %377 = vrot.lane.b32.xlu0 %v1812_v7, %s1753_s29 }
  0x3f   : > { %379 = vrot.lane.b32.xlu1 %v1823_v10, %s1753_s29 }
  0x42   : > { %381 = vrot.lane.b32.xlu0 %v1817_v9, %s1753_s29 }
  0x43   : > { %383 = vrot.lane.b32.xlu1 %v1831_v11, %s1753_s29 }
  0x46   : > { %491 = vrot.lane.b32.xlu0 %v1812_v7, %s1754_s30 }
  0x47   : > { %493 = vrot.lane.b32.xlu1 %v1823_v10, %s1754_s30 }
  0x4a   : > { %495 = vrot.lane.b32.xlu0 %v1817_v9, %s1754_s30 }
  0x4b   : > { %497 = vrot.lane.b32.xlu1 %v1831_v11, %s1754_s30 }
  0x4e   : > { %529 = vrot.lane.b32.xlu0 %v1812_v7, %s1756_s6 }
  0x4f   : > { %531 = vrot.lane.b32.xlu1 %v1823_v10, %s1756_s6 }
  0x52   : > { %533 = vrot.lane.b32.xlu0 %v1817_v9, %s1756_s6 }
  0x53   : > { %535 = vrot.lane.b32.xlu1 %v1831_v11, %s1756_s6 }
  0x88   : > { %v1891_v13 = vpop.permute.xlu0 %301 }
  0x89   : > { %v1893_v14 = vpop.permute.xlu1 %305 }
  0x8c   : > { %v1895_v15 = vpop.permute.xlu0 %415 }
  0x8d   : > { %v418_v16 = vpop.permute.xlu1 %417 }
  0x8e   : > { %v426_v54 = vsel %vm423_vm0, %v1895_v15, %v418_v16 }
  0x8f   : > { %v449_v26 = vmul.f32 %v1932_v33, %v426_v54  ;;  %v2052_v54 = vrot.slane %v1647_v63, %v1909_v25  ;;  %v2079_v33 = vrot.slane %v1648_v34, %v1909_v25 }
  0x90   : > { %v304_v17 = vpop.permute.xlu0 %303 }
  0x91   : > { %v1897_v18 = vpop.permute.xlu1 %307  ;;  %v312_v59 = vsel %vm309_vm1, %v1891_v13, %v304_v17  ;;  %v311_v1 = vsel %vm309_vm1, %v304_v17, %v1893_v14 }
  0x92   : > { %v2049_v39 = vmul.f32 %v1939_v35, %v312_v59  ;;  %v2069_v59 = vrot.slane %v1647_v63, %v1921_v29  ;;  %v310_v12 = vsel %vm309_vm1, %v1893_v14, %v1897_v18 }
  0x94   : > { %v420_v19 = vpop.permute.xlu0 %419  ;;  %v572_v14 = vrot.slane %v2049_v39, 6 }
  0x95   : > { %v422_v20 = vpop.permute.xlu1 %421  ;;  %v425_v2 = vsel %vm423_vm0, %v418_v16, %v420_v19  ;;  %v2043_v16 = vrot.slane %v1644_v50, %v1921_v29 }
  0x96   : > { %v424_v31 = vsel %vm423_vm0, %v420_v19, %v422_v20  ;;  %v427_v17 = vsel %vm423_vm0, %v422_v20, %v1895_v15  ;;  %v2055_v19 = vrot.slane %v1647_v63, %v1915_v27  ;;  %v2061_v15 = vmul.f32 %v1942_v36, %v311_v1 }
  0x97   : > { %2721 = vst [vmem:[#allocation11_spill] sm:$0xff] %v2043_v16  ;;  %v313_v20 = vsel %vm309_vm1, %v1897_v18, %v1891_v13  ;;  %v450_v50 = vmul.f32 %v1956_v41, %v425_v2  ;;  %v451_v3 = vmul.f32 %v1959_v42, %v424_v31  ;;  %v452_v1 = vmul.f32 %v1962_v43, %v427_v17 }
  0x98   : > { %v1899_v21 = vpop.permute.xlu0 %339  ;;  %v607_v13 = vrot.slane %v449_v26, 6  ;;  %v2082_v2 = vrot.slane %v1648_v34, %v1915_v27  ;;  %v2085_v63 = vrot.slane %v1648_v34, %v1918_v28  ;;  %v2088_v41 = vrot.slane %v1648_v34, %v1921_v29 }
  0x99   : > { %v1901_v22 = vpop.permute.xlu1 %341  ;;  %v2092_v18 = vmul.f32 %v1945_v37, %v313_v20  ;;  %v2104_v29 = vmul.f32 %v1948_v38, %v310_v12  ;;  %v608_v31 = vrot.slane %v450_v50, 6  ;;  %v609_v34 = vrot.slane %v451_v3, 6 }
  0x9a   : > { %v350_v25 = vsel %vm347_vm2, %v1899_v21, %v1901_v22  ;;  %v610_v39 = vrot.slane %v452_v1, 6 }
  0x9b   : > { %v374_v50 = vmul.f32 %v1969_v45, %v350_v25  ;;  %v571_v1 = vrot.slane %v2092_v18, 6  ;;  %v574_v42 = vrot.slane %v2104_v29, 6 }
  0x9c   : > { %v1903_v23 = vpop.permute.xlu0 %343 }
  0x9d   : > { %v1923_v30 = vpop.permute.xlu1 %345  ;;  %v349_v27 = vsel %vm347_vm2, %v1901_v22, %v1903_v23 }
  0x9e   : > { %v351_v22 = vsel %vm347_vm2, %v1923_v30, %v1899_v21  ;;  %v2121_v26 = vmul.f32 %v1972_v46, %v349_v27  ;;  %v654_v27 = vsel %vm639_vm4, %v1812_v7, %v607_v13  ;;  %v657_v7 = vsel %vm639_vm4, %v1831_v11, %v610_v39 }
  0x9f   : > { %v584_v13 = vrot.slane %v374_v50, 4 }
  0xa0   : > { %v1928_v32 = vpop.permute.xlu0 %453  ;;  %v585_v29 = vrot.slane %v2121_v26, 4 }
  0xa1   : > { %v1953_v40 = vpop.permute.xlu1 %455 }
  0xa2   : > { %v464_v17 = vsel %vm461_vm3, %v1928_v32, %v1953_v40 }
  0xa3   : > { %v487_v25 = vmul.f32 %v1987_v51, %v464_v17  ;;  %v655_v17 = vsel %vm639_vm4, %v1823_v10, %v608_v31 }
  0xa4   : > { %v1980_v49 = vpop.permute.xlu0 %457 }
  0xa5   : > { %v460_v56 = vpop.permute.xlu1 %459  ;;  %v463_v12 = vsel %vm461_vm3, %v1953_v40, %v1980_v49  ;;  %v348_v40 = vsel %vm347_vm2, %v1903_v23, %v1923_v30 }
  0xa6   : > { %v462_v3 = vsel %vm461_vm3, %v1980_v49, %v460_v56  ;;  %v465_v21 = vsel %vm461_vm3, %v460_v56, %v1928_v32  ;;  %v2139_v49 = vmul.f32 %v1975_v47, %v351_v22  ;;  %v488_v32 = vmul.f32 %v1990_v52, %v463_v12 }
  0xa7   : > { %v489_v18 = vmul.f32 %v1993_v53, %v462_v3  ;;  %v490_v23 = vmul.f32 %v1999_v55, %v465_v21  ;;  %v376_v22 = vmul.f32 %v1978_v48, %v348_v40  ;;  %v656_v12 = vsel %vm639_vm4, %v1817_v9, %v609_v34 }
  0xa8   : > { %v2027_v4 = vpop.permute.xlu0 %261  ;;  %v619_v52 = vrot.slane %v487_v25, 4  ;;  %v583_v11 = vrot.slane %v2139_v49, 4  ;;  %v620_v39 = vrot.slane %v488_v32, 4 }
  0xa9   : > { %v264_v44 = vpop.permute.xlu1 %263  ;;  %v621_v34 = vrot.slane %v489_v18, 4  ;;  %v622_v50 = vrot.slane %v490_v23, 4  ;;  %v586_v25 = vrot.slane %v376_v22, 4 }
  0xaa   : > { %v274_v56 = vsel %vm271_vm5, %v2027_v4, %v264_v44 }
  0xab   : > { %v298_v3 = vmul.f32 %v2002_v57, %v274_v56 }
  0xac   : > { %v266_v5 = vpop.permute.xlu0 %265 }
  0xad   : > { %v268_v28 = vpop.permute.xlu1 %267  ;;  %v273_v21 = vsel %vm271_vm5, %v264_v44, %v266_v5 }
  0xae   : > { %v275_v10 = vsel %vm271_vm5, %v268_v28, %v2027_v4  ;;  %v272_v26 = vsel %vm271_vm5, %v266_v5, %v268_v28  ;;  %v299_v49 = vmul.f32 %v2005_v58, %v273_v21 }
  0xaf   : > { %v297_v5 = vmul.f32 %v2011_v60, %v275_v10  ;;  %v300_v32 = vmul.f32 %v2014_v61, %v272_v26  ;;  %v659_v10 = vsel %vm644_vm7, %v655_v17, %v620_v39 }
  0xb0   : > { %v378_v20 = vpop.permute.xlu0 %377 }
  0xb1   : > { %v380_v43 = vpop.permute.xlu1 %379 }
  0xb2   : > { %v388_v9 = vsel %vm385_vm6, %v378_v20, %v380_v43 }
  0xb3   : > { %v412_v56 = vmul.f32 %v2017_v62, %v388_v9  ;;  %v661_v9 = vsel %vm644_vm7, %v657_v7, %v622_v50  ;;  %v643_v7 = vsel %vm639_vm4, %v300_v32, %v574_v42 }
  0xb4   : > { %v382_v30 = vpop.permute.xlu0 %381  ;;  %v648_v42 = vsel %vm644_vm7, %v643_v7, %v586_v25 }
  0xb5   : > { %v384_v31 = vpop.permute.xlu1 %383  ;;  %v387_v44 = vsel %vm385_vm6, %v380_v43, %v382_v30  ;;  %v641_v43 = vsel %vm639_vm4, %v298_v3, %v572_v14  ;;  %v660_v14 = vsel %vm644_vm7, %v656_v12, %v621_v34  ;;  %v640_v3 = vsel %vm639_vm4, %v297_v5, %v571_v1 }
  0xb6   : > { %v389_v40 = vsel %vm385_vm6, %v384_v31, %v378_v20  ;;  %v386_v28 = vsel %vm385_vm6, %v382_v30, %v384_v31  ;;  %v658_v20 = vsel %vm644_vm7, %v654_v27, %v619_v52  ;;  %v413_v23 = vmul.f32 %v2031_v6, %v387_v44 }
  0xb7   : > { %v411_v22 = vmul.f32 %v2034_v8, %v389_v40  ;;  %v414_v30 = vmul.f32 %v2043_v16, %v386_v28  ;;  %v646_v27 = vsel %vm644_vm7, %v641_v43, %v584_v13  ;;  %v2722_v44 = vrot.slane %v2061_v15, 6 }
  0xb8   : > { %v492_v4 = vpop.permute.xlu0 %491  ;;  %v596_v39 = vrot.slane %v412_v56, 2  ;;  %v597_v50 = vrot.slane %v413_v23, 2 }
  0xb9   : > { %v494_v18 = vpop.permute.xlu1 %493  ;;  %v642_v17 = vsel %vm639_vm4, %v299_v49, %v2722_v44  ;;  %v595_v12 = vrot.slane %v411_v22, 2  ;;  %v598_v1 = vrot.slane %v414_v30, 2 }
  0xba   : > { %v502_v21 = vsel %vm499_vm8, %v492_v4, %v494_v18  ;;  %v647_v32 = vsel %vm644_vm7, %v642_v17, %v585_v29 }
  0xbb   : > { %v525_v31 = vmul.f32 %v2052_v54, %v502_v21  ;;  %v653_v25 = vsel %vm649_vm9, %v648_v42, %v598_v1 }
  0xbc   : > { %v496_v26 = vpop.permute.xlu0 %495 }
  0xbd   : > { %v501_v52 = vsel %vm499_vm8, %v494_v18, %v496_v26  ;;  %v631_v40 = vrot.slane %v525_v31, 2  ;;  %v498_v21 = vpop.permute.xlu1 %497  ;;  %v645_v18 = vsel %vm644_vm7, %v640_v3, %v583_v11  ;;  %v652_v11 = vsel %vm649_vm9, %v647_v32, %v597_v50 }
  0xbe   : > { %v526_v28 = vmul.f32 %v2055_v19, %v501_v52  ;;  %v500_v34 = vsel %vm499_vm8, %v496_v26, %v498_v21  ;;  %v503_v13 = vsel %vm499_vm8, %v498_v21, %v492_v4  ;;  %v651_v4 = vsel %vm649_vm9, %v646_v27, %v596_v39 }
  0xbf   : > { %v527_v15 = vmul.f32 %v2058_v0, %v500_v34  ;;  %v528_v49 = vmul.f32 %v2069_v59, %v503_v13  ;;  %v662_v43 = vsel %vm649_vm9, %v658_v20, %v631_v40  ;;  %v650_v44 = vsel %vm649_vm9, %v645_v18, %v595_v12  ;;  %v670_v34 = vld [vmem:[%s2689_s2] sm:$0xf] }
  0xc0   : > { %v632_v5 = vrot.slane %v526_v28, 2  ;;  %v530_v56 = vpop.permute.xlu0 %529  ;;  %v1672_v3 = vpack.c.bf16 %v662_v43, %v650_v44 }
  0xc1   : > { %v633_v23 = vrot.slane %v527_v15, 2  ;;  %v634_v22 = vrot.slane %v528_v49, 2  ;;  %v532_v31 = vpop.permute.xlu1 %531  ;;  %v2723_v15 = vmov 0.0  }
  0xc2   : > { %v663_v30 = vsel %vm649_vm9, %v659_v10, %v632_v5  ;;  %v540_v26 = vsel %vm537_vm10, %v530_v56, %v532_v31 }
  0xc3   : > { %v1670_v52 = vpack.c.bf16 %v663_v30, %v651_v4  ;;  %v665_v29 = vsel %vm649_vm9, %v661_v9, %v634_v22  ;;  %v664_v17 = vsel %vm649_vm9, %v660_v14, %v633_v23  ;;  %v563_v27 = vmul.f32 %v2079_v33, %v540_v26 }
  0xc4   : > { %v534_v20 = vpop.permute.xlu0 %533  ;;  %v1674_v39 = vpack.c.bf16 %v665_v29, %v653_v25  ;;  %v1676_v40 = vpack.c.bf16 %v664_v17, %v652_v11 }
  0xc5   : > { %v539_v10 = vsel %vm537_vm10, %v532_v31, %v534_v20  ;;  %1671 = vmatprep.subr.bf16.mxu0 %v1670_v52  ;;  %v536_v21 = vpop.permute.xlu1 %535  ;;  %v666_v13 = vsel %vm639_vm4, %v563_v27, 1.0 }
  0xc6   : > { %v564_v28 = vmul.f32 %v2082_v2, %v539_v10  ;;  %1673 = vmatpush1.bf16.msra.mxu0 %v1672_v3  ;;  %v538_v7 = vsel %vm537_vm10, %v534_v20, %v536_v21  ;;  %v541_v9 = vsel %vm537_vm10, %v536_v21, %v530_v56  ;;  %1675 = vmatprep.subr.bf16.mxu1 %v1674_v39 }
  0xc7   : > { %v565_v14 = vmul.f32 %v2085_v63, %v538_v7  ;;  %v566_v50 = vmul.f32 %v2088_v41, %v541_v9  ;;  %1677 = vmatpush1.bf16.msra.mxu1 %v1676_v40 }
  0xc8   : > { %v667_v12 = vsel %vm639_vm4, %v564_v28, 1.0 }
  0xc9   : > { %1649 = vmatprep.subr.msk.mxu0 %vm675_vm11, %v667_v12  ;;  %v669_v1 = vsel %vm639_vm4, %v566_v50, 1.0  ;;  %v668_v5 = vsel %vm639_vm4, %v565_v14, 1.0 }
  0xca   : > { %1650 = vmatpush1.msk.msra.mxu0 %vm675_vm11, %v666_v13  ;;  %1652 = vmatprep.subr.msk.mxu1 %vm675_vm11, %v669_v1 }
  0xcb   : > { %1651 = vmatmul.mubr.msk.f32.vlgmr.msra.gmra.mrb[0].mxu0 %vm671_vm12, %v670_v34  ;;  %1653 = vmatpush1.msk.msra.mxu1 %vm675_vm11, %v668_v5 }
  0xcc   : > { %1108 = vmatprep.mubr.f32.mxu0 %v2723_v15  ;;  %1654 = vmatmul.mubr.msk.f32.vlgmr.msra.gmra.mrb[0].mxu1 %vm671_vm12, %v670_v34 }
  0xcd   : > { %1179 = vmatprep.mubr.f32.mxu1 %v2723_v15 }
 0x19e   : > { %v2239_v49 = vpop.f32.mrb[0].mxu0 }
 0x19f   : > { %846 = vrot.lane.b32.xlu0 %v2239_v49, %s1748_s24  ;;  %v2243_v56 = vpop.f32.mrb[1].mxu0  ;;  %v2247_v18 = vpop.f32.mrb[0].mxu1 }
 0x1a0   : > { %848 = vrot.lane.b32.xlu1 %v2243_v56, %s1748_s24  ;;  %v2249_v43 = vpop.f32.mrb[1].mxu1 }
 0x1a3   : > { %878 = vrot.lane.b32.xlu0 %v2239_v49, %s1753_s29 }
 0x1a4   : > { %880 = vrot.lane.b32.xlu1 %v2243_v56, %s1753_s29 }
 0x1a7   : > { %830 = vrot.lane.b32.xlu0 %v2239_v49, %s1752_s28 }
 0x1a8   : > { %832 = vrot.lane.b32.xlu1 %v2243_v56, %s1752_s28 }
 0x1ab   : > { %862 = vrot.lane.b32.xlu0 %v2239_v49, %s1750_s26 }
 0x1ac   : > { %864 = vrot.lane.b32.xlu1 %v2243_v56, %s1750_s26 }
 0x1af   : > { %894 = vrot.lane.b32.xlu0 %v2239_v49, %s1749_s25 }
 0x1b0   : > { %896 = vrot.lane.b32.xlu1 %v2243_v56, %s1749_s25 }
 0x1b3   : > { %926 = vrot.lane.b32.xlu0 %v2239_v49, %s1754_s30 }
 0x1b4   : > { %928 = vrot.lane.b32.xlu1 %v2243_v56, %s1754_s30 }
 0x1b7   : > { %910 = vrot.lane.b32.xlu0 %v2239_v49, %s1751_s27 }
 0x1b8   : > { %912 = vrot.lane.b32.xlu1 %v2243_v56, %s1751_s27 }
 0x1bb   : > { %850 = vrot.lane.b32.xlu0 %v2247_v18, %s1748_s24 }
 0x1bc   : > { %852 = vrot.lane.b32.xlu1 %v2249_v43, %s1748_s24 }
 0x1bf   : > { %882 = vrot.lane.b32.xlu0 %v2247_v18, %s1753_s29 }
 0x1c0   : > { %884 = vrot.lane.b32.xlu1 %v2249_v43, %s1753_s29 }
 0x1c3   : > { %834 = vrot.lane.b32.xlu0 %v2247_v18, %s1752_s28 }
 0x1c4   : > { %836 = vrot.lane.b32.xlu1 %v2249_v43, %s1752_s28 }
 0x1c7   : > { %866 = vrot.lane.b32.xlu0 %v2247_v18, %s1750_s26 }
 0x1c8   : > { %868 = vrot.lane.b32.xlu1 %v2249_v43, %s1750_s26 }
 0x1cb   : > { %898 = vrot.lane.b32.xlu0 %v2247_v18, %s1749_s25 }
 0x1cc   : > { %900 = vrot.lane.b32.xlu1 %v2249_v43, %s1749_s25 }
 0x1cf   : > { %930 = vrot.lane.b32.xlu0 %v2247_v18, %s1754_s30 }
 0x1d0   : > { %932 = vrot.lane.b32.xlu1 %v2249_v43, %s1754_s30 }
 0x1d3   : > { %914 = vrot.lane.b32.xlu0 %v2247_v18, %s1751_s27 }
 0x1d4   : > { %916 = vrot.lane.b32.xlu1 %v2249_v43, %s1751_s27 }
 0x1d7   : > { %942 = vrot.lane.b32.xlu0 %v2239_v49, %s1756_s6 }
 0x1d8   : > { %944 = vrot.lane.b32.xlu1 %v2243_v56, %s1756_s6 }
 0x1db   : > { %946 = vrot.lane.b32.xlu0 %v2247_v18, %s1756_s6 }
 0x1dc   : > { %948 = vrot.lane.b32.xlu1 %v2249_v43, %s1756_s6 }
 0x211   : > { %v847_v42 = vpop.permute.xlu0 %846 }
 0x212   : > { %v849_v32 = vpop.permute.xlu1 %848 }
 0x213   : > { %v856_v31 = vsel %vm309_vm1, %v847_v42, %v849_v32 }
 0x214   : > { %v859_v44 = vmul.f32 %v856_v31, %v1939_v35 }
 0x215   : > { %v879_v23 = vpop.permute.xlu0 %878 }
 0x216   : > { %v881_v22 = vpop.permute.xlu1 %880  ;;  %v963_v17 = vrot.slane %v859_v44, 4 }
 0x217   : > { %v888_v4 = vsel %vm385_vm6, %v879_v23, %v881_v22 }
 0x218   : > { %v891_v11 = vmul.f32 %v888_v4, %v2017_v62 }
 0x219   : > { %v831_v30 = vpop.permute.xlu0 %830 }
 0x21a   : > { %v833_v26 = vpop.permute.xlu1 %832  ;;  %v975_v27 = vrot.slane %v891_v11, 4 }
 0x21b   : > { %v840_v52 = vsel %vm271_vm5, %v831_v30, %v833_v26 }
 0x21c   : > { %v843_v3 = vmul.f32 %v840_v52, %v2002_v57 }
 0x21d   : > { %v863_v20 = vpop.permute.xlu0 %862 }
 0x21e   : > { %v865_v25 = vpop.permute.xlu1 %864  ;;  %v1007_v28 = vsel %vm644_vm7, %v843_v3, %v963_v17 }
 0x21f   : > { %v872_v29 = vsel %vm347_vm2, %v863_v20, %v865_v25 }
 0x220   : > { %v875_v10 = vmul.f32 %v872_v29, %v1969_v45 }
 0x221   : > { %v895_v39 = vpop.permute.xlu0 %894 }
 0x222   : > { %v897_v40 = vpop.permute.xlu1 %896  ;;  %v1011_v21 = vsel %vm644_vm7, %v875_v10, %v975_v27 }
 0x223   : > { %v1678_v7 = vpack.c.bf16 %v1011_v21, %v1007_v28 }
 0x225   : > { %v2325_v9 = vpop.permute.xlu0 %926  ;;  %1679 = vmatprep.subr.bf16.mxu0 %v1678_v7 }
 0x226   : > { %v2327_v14 = vpop.permute.xlu1 %928 }
 0x227   : > { %v936_v10 = vsel %vm499_vm8, %v2325_v9, %v2327_v14 }
 0x229   : > { %v2329_v50 = vpop.permute.xlu0 %910 }
 0x22a   : > { %v2331_v12 = vpop.permute.xlu1 %912 }
 0x22d   : > { %v851_v34 = vpop.permute.xlu0 %850 }
 0x22e   : > { %v853_v13 = vpop.permute.xlu1 %852  ;;  %v855_v44 = vsel %vm309_vm1, %v849_v32, %v851_v34  ;;  %v904_v32 = vsel %vm423_vm0, %v895_v39, %v897_v40 }
 0x22f   : > { %v857_v31 = vsel %vm309_vm1, %v853_v13, %v847_v42  ;;  %v854_v29 = vsel %vm309_vm1, %v851_v34, %v853_v13  ;;  %v860_v7 = vmul.f32 %v855_v44, %v1942_v36 }
 0x230   : > { %v858_v17 = vmul.f32 %v857_v31, %v1945_v37  ;;  %v861_v34 = vmul.f32 %v854_v29, %v1948_v38 }
 0x231   : > { %v883_v1 = vpop.permute.xlu0 %882 }
 0x232   : > { %v885_v5 = vpop.permute.xlu1 %884  ;;  %v887_v4 = vsel %vm385_vm6, %v881_v22, %v883_v1 }
 0x233   : > { %v889_v52 = vsel %vm385_vm6, %v885_v5, %v879_v23  ;;  %v886_v11 = vsel %vm385_vm6, %v883_v1, %v885_v5  ;;  %v892_v42 = vmul.f32 %v887_v4, %v2031_v6  ;;  %v962_v5 = vrot.slane %v858_v17, 4 }
 0x234   : > { %v890_v27 = vmul.f32 %v889_v52, %v2034_v8  ;;  %v893_v28 = vmul.f32 %v886_v11, %v2043_v16 }
 0x235   : > { %v835_v3 = vpop.permute.xlu0 %834  ;;  %v976_v31 = vrot.slane %v892_v42, 4 }
 0x236   : > { %v837_v22 = vpop.permute.xlu1 %836  ;;  %v974_v4 = vrot.slane %v890_v27, 4  ;;  %v964_v27 = vrot.slane %v860_v7, 4 }
 0x237   : > { %v841_v23 = vsel %vm271_vm5, %v837_v22, %v831_v30  ;;  %v838_v21 = vsel %vm271_vm5, %v835_v3, %v837_v22  ;;  %v839_v30 = vsel %vm271_vm5, %v833_v26, %v835_v3  ;;  %v977_v3 = vrot.slane %v893_v28, 4 }
 0x238   : > { %v842_v13 = vmul.f32 %v841_v23, %v2011_v60  ;;  %v845_v16 = vmul.f32 %v838_v21, %v2014_v61  ;;  %v844_v29 = vmul.f32 %v839_v30, %v2005_v58  ;;  %v965_v23 = vrot.slane %v861_v34, 4 }
 0x239   : > { %v867_v1 = vpop.permute.xlu0 %866 }
 0x23a   : > { %v871_v52 = vsel %vm347_vm2, %v865_v25, %v867_v1  ;;  %v869_v11 = vpop.permute.xlu1 %868  ;;  %v920_v25 = vsel %vm461_vm3, %v2329_v50, %v2331_v12  ;;  %v1006_v21 = vsel %vm644_vm7, %v842_v13, %v962_v5  ;;  %v1009_v13 = vsel %vm644_vm7, %v845_v16, %v965_v23 }
 0x23b   : > { %v876_v22 = vmul.f32 %v871_v52, %v1972_v46  ;;  %v870_v44 = vsel %vm347_vm2, %v867_v1, %v869_v11  ;;  %v873_v26 = vsel %vm347_vm2, %v869_v11, %v863_v20  ;;  %v938_v5 = vmul.f32 %v936_v10, %v2052_v54 }
 0x23c   : > { %v874_v17 = vmul.f32 %v873_v26, %v1975_v47  ;;  %v877_v42 = vmul.f32 %v870_v44, %v1978_v48  ;;  %v2726_v48 = vld [vmem:[#allocation6_spill] sm:$0xff]  ;;  %v922_v47 = vmul.f32 %v920_v25, %v1987_v51 }
 0x23d   : > { %v899_v1 = vpop.permute.xlu0 %898  ;;  %v1012_v52 = vsel %vm644_vm7, %v876_v22, %v976_v31  ;;  %v1008_v31 = vsel %vm644_vm7, %v844_v29, %v964_v27  ;;  %v2724_v22 = vld [vmem:[#allocation4_spill] sm:$0xff]  ;;  %v998_v23 = vrot.slane %v938_v5, 4 }
 0x23e   : > { %v1010_v20 = vsel %vm644_vm7, %v874_v17, %v974_v4  ;;  %v903_v28 = vsel %vm423_vm0, %v897_v40, %v899_v1  ;;  %v901_v30 = vpop.permute.xlu1 %900  ;;  %v1013_v11 = vsel %vm644_vm7, %v877_v42, %v977_v3  ;;  %v906_v26 = vmul.f32 %v904_v32, %v2724_v22  ;;  %v2725_v40 = vld [vmem:[#allocation5_spill] sm:$0xff] }
 0x23f   : > { %v902_v44 = vsel %vm423_vm0, %v899_v1, %v901_v30  ;;  %v905_v7 = vsel %vm423_vm0, %v901_v30, %v895_v39  ;;  %v1680_v34 = vpack.c.bf16 %v1010_v20, %v1006_v21  ;;  %v1686_v4 = vpack.c.bf16 %v1013_v11, %v1009_v13  ;;  %v2727_v39 = vld [vmem:[#allocation7_spill] sm:$0xff] }
 0x240   : > { %v907_v17 = vmul.f32 %v903_v28, %v2725_v40  ;;  %v908_v3 = vmul.f32 %v902_v44, %v2726_v48  ;;  %v1688_v1 = vpack.c.bf16 %v1012_v52, %v1008_v31  ;;  %v909_v21 = vmul.f32 %v905_v7, %v2727_v39  ;;  %v2728_v31 = vld [vmem:[#allocation10_spill] sm:$0xff] }
 0x241   : > { %v931_v42 = vpop.permute.xlu0 %930  ;;  %1681 = vmatpush1.bf16.msra.mxu0 %v1680_v34  ;;  %1687 = vmatprep.subr.bf16.mxu1 %v1686_v4  ;;  %v986_v20 = vrot.slane %v906_v26, 4  ;;  %v1018_v11 = vsel %vm644_vm7, %v922_v47, %v998_v23 }
 0x242   : > { %v935_v16 = vsel %vm499_vm8, %v2327_v14, %v931_v42  ;;  %v933_v10 = vpop.permute.xlu1 %932  ;;  %1689 = vmatpush1.bf16.msra.mxu1 %v1688_v1  ;;  %v987_v28 = vrot.slane %v907_v17, 4  ;;  %v988_v14 = vrot.slane %v908_v3, 4  ;;  %v989_v44 = vrot.slane %v909_v21, 4 }
 0x243   : > { %v939_v29 = vmul.f32 %v935_v16, %v2055_v19  ;;  %v934_v32 = vsel %vm499_vm8, %v931_v42, %v933_v10  ;;  %v937_v27 = vsel %vm499_vm8, %v933_v10, %v2325_v9 }
 0x244   : > { %v940_v25 = vmul.f32 %v934_v32, %v2058_v0  ;;  %v941_v52 = vmul.f32 %v937_v27, %v2069_v59  ;;  %v1016_v42 = vsel %vm644_vm7, %v2247_v18, %v988_v14  ;;  %v1015_v21 = vsel %vm644_vm7, %v2243_v56, %v987_v28 }
 0x245   : > { %v915_v30 = vpop.permute.xlu0 %914  ;;  %v999_v13 = vrot.slane %v939_v29, 4  ;;  %v1017_v32 = vsel %vm644_vm7, %v2249_v43, %v989_v44 }
 0x246   : > { %v919_v7 = vsel %vm461_vm3, %v2331_v12, %v915_v30  ;;  %v917_v34 = vpop.permute.xlu1 %916  ;;  %v1000_v26 = vrot.slane %v940_v25, 4  ;;  %v1001_v17 = vrot.slane %v941_v52, 4  ;;  %v1014_v12 = vsel %vm644_vm7, %v2239_v49, %v986_v20 }
 0x247   : > { %v923_v9 = vmul.f32 %v919_v7, %v2728_v31  ;;  %v918_v5 = vsel %vm461_vm3, %v915_v30, %v917_v34  ;;  %v921_v4 = vsel %vm461_vm3, %v917_v34, %v2329_v50  ;;  %v1684_v23 = vpack.c.bf16 %v1018_v11, %v1014_v12  ;;  %v1026_v34 = vld [vmem:[%s2690_s3] sm:$0xf] }
 0x248   : > { %v924_v47 = vmul.f32 %v918_v5, %v1993_v53  ;;  %v925_v3 = vmul.f32 %v921_v4, %v1999_v55 }
 0x249   : > { %v943_v1 = vpop.permute.xlu0 %942  ;;  %v1019_v16 = vsel %vm644_vm7, %v923_v9, %v999_v13 }
 0x24a   : > { %v1020_v50 = vsel %vm644_vm7, %v924_v47, %v1000_v26  ;;  %v945_v10 = vpop.permute.xlu1 %944  ;;  %v1682_v29 = vpack.c.bf16 %v1019_v16, %v1015_v21  ;;  %v1021_v27 = vsel %vm644_vm7, %v925_v3, %v1001_v17 }
 0x24b   : > { %v952_v49 = vsel %vm537_vm10, %v943_v1, %v945_v10  ;;  %v1690_v18 = vpack.c.bf16 %v1021_v27, %v1017_v32  ;;  %v1692_v25 = vpack.c.bf16 %v1020_v50, %v1016_v42 }
 0x24c   : > { %1683 = vmatprep.subr.bf16.mxu0 %v1682_v29  ;;  %v954_v56 = vmul.f32 %v952_v49, %v2079_v33 }
 0x24d   : > { %v947_v52 = vpop.permute.xlu0 %946  ;;  %1685 = vmatpush1.bf16.msra.mxu0 %v1684_v23  ;;  %1691 = vmatprep.subr.bf16.mxu1 %v1690_v18 }
 0x24e   : > { %v951_v20 = vsel %vm537_vm10, %v945_v10, %v947_v52  ;;  %1693 = vmatpush1.bf16.msra.mxu1 %v1692_v25  ;;  %v949_v28 = vpop.permute.xlu1 %948  ;;  %v1022_v13 = vsel %vm644_vm7, %v954_v56, 1.0 }
 0x24f   : > { %v955_v43 = vmul.f32 %v951_v20, %v2082_v2  ;;  %v950_v14 = vsel %vm537_vm10, %v947_v52, %v949_v28  ;;  %v953_v30 = vsel %vm537_vm10, %v949_v28, %v943_v1 }
 0x250   : > { %v956_v11 = vmul.f32 %v950_v14, %v2085_v63  ;;  %v957_v44 = vmul.f32 %v953_v30, %v2088_v41 }
 0x251   : > { %v1023_v7 = vsel %vm644_vm7, %v955_v43, 1.0 }
 0x252   : > { %v1024_v9 = vsel %vm644_vm7, %v956_v11, 1.0  ;;  %1655 = vmatprep.subr.msk.mxu0 %vm1031_vm13, %v1023_v7  ;;  %v1025_v5 = vsel %vm644_vm7, %v957_v44, 1.0 }
 0x253   : > { %1656 = vmatpush1.msk.msra.mxu0 %vm1031_vm13, %v1022_v13  ;;  %1658 = vmatprep.subr.msk.mxu1 %vm1031_vm13, %v1025_v5 }
 0x254   : > { %1657 = vmatmul.mubr.msk.f32.vlgmr.msra.gmra.mrb[2].mxu0 %vm1027_vm14, %v1026_v34  ;;  %1659 = vmatpush1.msk.msra.mxu1 %vm1031_vm13, %v1024_v9 }
 0x255   : > { %1660 = vmatmul.mubr.msk.f32.vlgmr.msra.gmra.mrb[2].mxu1 %vm1027_vm14, %v1026_v34  ;;  %1462 = vmatprep.mubr.f32.mxu0 %v2723_v15 }
 0x256   : > { %1533 = vmatprep.mubr.f32.mxu1 %v2723_v15 }
 0x327   : > { %v2458_v4 = vpop.f32.mrb[2].mxu0 }
 0x328   : > { %1202 = vrot.lane.b32.xlu0 %v2458_v4, %s1748_s24  ;;  %v2462_v26 = vpop.f32.mrb[3].mxu0  ;;  %v2464_v17 = vpop.f32.mrb[2].mxu1 }
 0x329   : > { %1204 = vrot.lane.b32.xlu1 %v2462_v26, %s1748_s24  ;;  %v2468_v47 = vpop.f32.mrb[3].mxu1 }
 0x32c   : > { %1234 = vrot.lane.b32.xlu0 %v2458_v4, %s1753_s29 }
 0x32d   : > { %1236 = vrot.lane.b32.xlu1 %v2462_v26, %s1753_s29 }
 0x330   : > { %1186 = vrot.lane.b32.xlu0 %v2458_v4, %s1752_s28 }
 0x331   : > { %1188 = vrot.lane.b32.xlu1 %v2462_v26, %s1752_s28 }
 0x334   : > { %1218 = vrot.lane.b32.xlu0 %v2458_v4, %s1750_s26 }
 0x335   : > { %1220 = vrot.lane.b32.xlu1 %v2462_v26, %s1750_s26 }
 0x338   : > { %1250 = vrot.lane.b32.xlu0 %v2458_v4, %s1749_s25 }
 0x339   : > { %1252 = vrot.lane.b32.xlu1 %v2462_v26, %s1749_s25 }
 0x33c   : > { %1282 = vrot.lane.b32.xlu0 %v2458_v4, %s1754_s30 }
 0x33d   : > { %1284 = vrot.lane.b32.xlu1 %v2462_v26, %s1754_s30 }
 0x340   : > { %1266 = vrot.lane.b32.xlu0 %v2458_v4, %s1751_s27 }
 0x341   : > { %1268 = vrot.lane.b32.xlu1 %v2462_v26, %s1751_s27 }
 0x344   : > { %1206 = vrot.lane.b32.xlu0 %v2464_v17, %s1748_s24 }
 0x345   : > { %1208 = vrot.lane.b32.xlu1 %v2468_v47, %s1748_s24 }
 0x348   : > { %1238 = vrot.lane.b32.xlu0 %v2464_v17, %s1753_s29 }
 0x349   : > { %1240 = vrot.lane.b32.xlu1 %v2468_v47, %s1753_s29 }
 0x34c   : > { %1190 = vrot.lane.b32.xlu0 %v2464_v17, %s1752_s28 }
 0x34d   : > { %1192 = vrot.lane.b32.xlu1 %v2468_v47, %s1752_s28 }
 0x350   : > { %1222 = vrot.lane.b32.xlu0 %v2464_v17, %s1750_s26 }
 0x351   : > { %1224 = vrot.lane.b32.xlu1 %v2468_v47, %s1750_s26  ;;  %s1641_s26 = sshll.u32 %s2736_s19, 2 }
 0x352   : > { %s222_s29 = scalar_lea.vmem %s2692_s5, %s1641_s26 }
 0x354   : > { %1254 = vrot.lane.b32.xlu0 %v2464_v17, %s1749_s25 }
 0x355   : > { %1256 = vrot.lane.b32.xlu1 %v2468_v47, %s1749_s25 }
 0x358   : > { %1286 = vrot.lane.b32.xlu0 %v2464_v17, %s1754_s30 }
 0x359   : > { %1288 = vrot.lane.b32.xlu1 %v2468_v47, %s1754_s30 }
 0x35c   : > { %1270 = vrot.lane.b32.xlu0 %v2464_v17, %s1751_s27 }
 0x35d   : > { %1272 = vrot.lane.b32.xlu1 %v2468_v47, %s1751_s27 }
 0x360   : > { %1298 = vrot.lane.b32.xlu0 %v2458_v4, %s1756_s6 }
 0x361   : > { %1300 = vrot.lane.b32.xlu1 %v2462_v26, %s1756_s6 }
 0x364   : > { %1302 = vrot.lane.b32.xlu0 %v2464_v17, %s1756_s6 }
 0x365   : > { %1304 = vrot.lane.b32.xlu1 %v2468_v47, %s1756_s6 }
 0x39a   : > { %v1203_v15 = vpop.permute.xlu0 %1202 }
 0x39b   : > { %v1205_v3 = vpop.permute.xlu1 %1204 }
 0x39c   : > { %v1212_v1 = vsel %vm309_vm1, %v1203_v15, %v1205_v3 }
 0x39d   : > { %v1215_v29 = vmul.f32 %v1212_v1, %v1939_v35 }
 0x39e   : > { %v1235_v12 = vpop.permute.xlu0 %1234 }
 0x39f   : > { %v1237_v42 = vpop.permute.xlu1 %1236  ;;  %v1319_v25 = vrot.slane %v1215_v29, 4 }
 0x3a0   : > { %v1244_v21 = vsel %vm385_vm6, %v1235_v12, %v1237_v42 }
 0x3a1   : > { %v1247_v32 = vmul.f32 %v1244_v21, %v2017_v62 }
 0x3a2   : > { %v1187_v16 = vpop.permute.xlu0 %1186 }
 0x3a3   : > { %v1189_v50 = vpop.permute.xlu1 %1188  ;;  %v1331_v52 = vrot.slane %v1247_v32, 4 }
 0x3a4   : > { %v1196_v10 = vsel %vm271_vm5, %v1187_v16, %v1189_v50 }
 0x3a5   : > { %v1199_v49 = vmul.f32 %v1196_v10, %v2002_v57 }
 0x3a6   : > { %v1219_v27 = vpop.permute.xlu0 %1218 }
 0x3a7   : > { %v1221_v23 = vpop.permute.xlu1 %1220  ;;  %v1363_v43 = vsel %vm644_vm7, %v1199_v49, %v1319_v25  ;;  %v2729_v25 = vld [vmem:[#allocation11_spill] sm:$0xff] }
 0x3a8   : > { %v1228_v18 = vsel %vm347_vm2, %v1219_v27, %v1221_v23 }
 0x3a9   : > { %v1231_v56 = vmul.f32 %v1228_v18, %v1969_v45 }
 0x3aa   : > { %v1251_v20 = vpop.permute.xlu0 %1250 }
 0x3ab   : > { %v1253_v28 = vpop.permute.xlu1 %1252  ;;  %v1367_v14 = vsel %vm644_vm7, %v1231_v56, %v1331_v52 }
 0x3ac   : > { %v1694_v35 = vpack.c.bf16 %v1367_v14, %v1363_v43 }
 0x3ae   : > { %v2544_v30 = vpop.permute.xlu0 %1282  ;;  %1695 = vmatprep.subr.bf16.mxu0 %v1694_v35 }
 0x3af   : > { %v2546_v62 = vpop.permute.xlu1 %1284 }
 0x3b0   : > { %v1292_v18 = vsel %vm499_vm8, %v2544_v30, %v2546_v62 }
 0x3b2   : > { %v2548_v57 = vpop.permute.xlu0 %1266 }
 0x3b3   : > { %v2550_v11 = vpop.permute.xlu1 %1268 }
 0x3b6   : > { %v1207_v44 = vpop.permute.xlu0 %1206 }
 0x3b7   : > { %v1209_v7 = vpop.permute.xlu1 %1208  ;;  %v1211_v1 = vsel %vm309_vm1, %v1205_v3, %v1207_v44  ;;  %v1260_v3 = vsel %vm423_vm0, %v1251_v20, %v1253_v28 }
 0x3b8   : > { %v1213_v13 = vsel %vm309_vm1, %v1209_v7, %v1203_v15  ;;  %v1210_v29 = vsel %vm309_vm1, %v1207_v44, %v1209_v7 }
 0x3b9   : > { %v1214_v32 = vmul.f32 %v1213_v13, %v1945_v37 }
 0x3ba   : > { %v1239_v34 = vpop.permute.xlu0 %1238 }
 0x3bb   : > { %v1241_v45 = vpop.permute.xlu1 %1240  ;;  %v1243_v9 = vsel %vm385_vm6, %v1237_v42, %v1239_v34  ;;  %v1318_v14 = vrot.slane %v1214_v32, 4 }
 0x3bc   : > { %v1245_v5 = vsel %vm385_vm6, %v1241_v45, %v1235_v12  ;;  %v1242_v21 = vsel %vm385_vm6, %v1239_v34, %v1241_v45  ;;  %v1248_v15 = vmul.f32 %v1243_v9, %v2031_v6  ;;  %v1216_v6 = vmul.f32 %v1211_v1, %v1942_v36  ;;  %v2730_v9 = vld [vmem:[#allocation8_spill] sm:$0xff]  ;;  %v2731_v1 = vld [vmem:[#allocation9_spill] sm:$0xff] }
 0x3bd   : > { %v1246_v49 = vmul.f32 %v1245_v5, %v2034_v8  ;;  %v1249_v52 = vmul.f32 %v1242_v21, %v2729_v25  ;;  %v1217_v8 = vmul.f32 %v1210_v29, %v1948_v38 }
 0x3be   : > { %v1191_v10 = vpop.permute.xlu0 %1190  ;;  %v1332_v35 = vrot.slane %v1248_v15, 4 }
 0x3bf   : > { %v1193_v42 = vpop.permute.xlu1 %1192  ;;  %v1330_v44 = vrot.slane %v1246_v49, 4 }
 0x3c0   : > { %v1197_v12 = vsel %vm271_vm5, %v1193_v42, %v1187_v16  ;;  %v1194_v37 = vsel %vm271_vm5, %v1191_v10, %v1193_v42  ;;  %v1195_v16 = vsel %vm271_vm5, %v1189_v50, %v1191_v10  ;;  %v1333_v50 = vrot.slane %v1249_v52, 4 }
 0x3c1   : > { %v1198_v56 = vmul.f32 %v1197_v12, %v2011_v60  ;;  %v1201_v45 = vmul.f32 %v1194_v37, %v2014_v61  ;;  %v1200_v60 = vmul.f32 %v1195_v16, %v2005_v58  ;;  %v1276_v61 = vsel %vm461_vm3, %v2548_v57, %v2550_v11 }
 0x3c2   : > { %v1223_v43 = vpop.permute.xlu0 %1222  ;;  %v1294_v37 = vmul.f32 %v1292_v18, %v2052_v54  ;;  %v1262_v16 = vmul.f32 %v1260_v3, %v2724_v22 }
 0x3c3   : > { %v1227_v7 = vsel %vm347_vm2, %v1221_v23, %v1223_v43  ;;  %v1225_v34 = vpop.permute.xlu1 %1224  ;;  %v1320_v23 = vrot.slane %v1216_v6, 4  ;;  %v1362_v10 = vsel %vm644_vm7, %v1198_v56, %v1318_v14 }
 0x3c4   : > { %v1232_v13 = vmul.f32 %v1227_v7, %v1972_v46  ;;  %v1226_v36 = vsel %vm347_vm2, %v1223_v43, %v1225_v34  ;;  %v1229_v38 = vsel %vm347_vm2, %v1225_v34, %v1219_v27  ;;  %v1321_v46 = vrot.slane %v1217_v8, 4 }
 0x3c5   : > { %v1230_v5 = vmul.f32 %v1229_v38, %v2730_v9  ;;  %v1233_v21 = vmul.f32 %v1226_v36, %v2731_v1  ;;  %v1364_v6 = vsel %vm644_vm7, %v1200_v60, %v1320_v23  ;;  %v1342_v3 = vrot.slane %v1262_v16, 4 }
 0x3c6   : > { %v1255_v29 = vpop.permute.xlu0 %1254  ;;  %v1368_v32 = vsel %vm644_vm7, %v1232_v13, %v1332_v35  ;;  %v1365_v52 = vsel %vm644_vm7, %v1201_v45, %v1321_v46  ;;  %v1278_v35 = vmul.f32 %v1276_v61, %v1987_v51  ;;  %v1757_v16 = vmov 1966171168  }
 0x3c7   : > { %v1366_v27 = vsel %vm644_vm7, %v1230_v5, %v1330_v44  ;;  %v1259_v58 = vsel %vm423_vm0, %v1253_v28, %v1255_v29  ;;  %v1257_v15 = vpop.permute.xlu1 %1256  ;;  %v1369_v49 = vsel %vm644_vm7, %v1233_v21, %v1333_v50  ;;  %v1704_v14 = vpack.c.bf16 %v1368_v32, %v1364_v6 }
 0x3c8   : > { %v1258_v42 = vsel %vm423_vm0, %v1255_v29, %v1257_v15  ;;  %v1261_v12 = vsel %vm423_vm0, %v1257_v15, %v1251_v20  ;;  %v1696_v25 = vpack.c.bf16 %v1366_v27, %v1362_v10  ;;  %v1702_v8 = vpack.c.bf16 %v1369_v49, %v1365_v52 }
 0x3c9   : > { %v1263_v28 = vmul.f32 %v1259_v58, %v2725_v40  ;;  %v1264_v56 = vmul.f32 %v1258_v42, %v2726_v48  ;;  %v1265_v20 = vmul.f32 %v1261_v12, %v2727_v39  ;;  %v1354_v40 = vrot.slane %v1294_v37, 4 }
 0x3ca   : > { %v1287_v43 = vpop.permute.xlu0 %1286  ;;  %1697 = vmatpush1.bf16.msra.mxu0 %v1696_v25  ;;  %1703 = vmatprep.subr.bf16.mxu1 %v1702_v8 }
 0x3cb   : > { %v1291_v54 = vsel %vm499_vm8, %v2546_v62, %v1287_v43  ;;  %v1289_v18 = vpop.permute.xlu1 %1288  ;;  %1705 = vmatpush1.bf16.msra.mxu1 %v1704_v14  ;;  %v1343_v7 = vrot.slane %v1263_v28, 4  ;;  %v1344_v62 = vrot.slane %v1264_v56, 4  ;;  %v1374_v45 = vsel %vm644_vm7, %v1278_v35, %v1354_v40  ;;  %v2733_v40 = vld [vmem:[#allocation2_spill] sm:$0xff] }
 0x3cc   : > { %v1295_v44 = vmul.f32 %v1291_v54, %v2055_v19  ;;  %v1290_v22 = vsel %vm499_vm8, %v1287_v43, %v1289_v18  ;;  %v1293_v48 = vsel %vm499_vm8, %v1289_v18, %v2544_v30  ;;  %v1345_v19 = vrot.slane %v1265_v20, 4  ;;  %v2732_v20 = vld [vmem:[#allocation3_spill] sm:$0xff] }
 0x3cd   : > { %v1296_v51 = vmul.f32 %v1290_v22, %v2058_v0  ;;  %v1297_v39 = vmul.f32 %v1293_v48, %v2069_v59  ;;  %v1372_v1 = vsel %vm644_vm7, %v2464_v17, %v1344_v62  ;;  %v1371_v21 = vsel %vm644_vm7, %v2462_v26, %v1343_v7 }
 0x3ce   : > { %v1271_v34 = vpop.permute.xlu0 %1270  ;;  %v1355_v38 = vrot.slane %v1295_v44, 4  ;;  %v1569_v28 = vunpack.c.l.s4 %v1757_v16  ;;  %v2734_v7 = vlaneseq }
 0x3cf   : > { %v1275_v13 = vsel %vm461_vm3, %v2550_v11, %v1271_v34  ;;  %v1273_v36 = vpop.permute.xlu1 %1272  ;;  %v1356_v50 = vrot.slane %v1296_v51, 4  ;;  %v1357_v60 = vrot.slane %v1297_v39, 4  ;;  %v1370_v11 = vsel %vm644_vm7, %v2458_v4, %v1342_v3  ;;  %v1738_v39 = vld [vmem:[%s1805_s23] sm:$0xff] }
 0x3d0   : > { %v1279_v30 = vmul.f32 %v1275_v13, %v2728_v31  ;;  %v1274_v0 = vsel %vm461_vm3, %v1271_v34, %v1273_v36  ;;  %v1277_v59 = vsel %vm461_vm3, %v1273_v36, %v2548_v57  ;;  %v1700_v10 = vpack.c.bf16 %v1374_v45, %v1370_v11 }
 0x3d1   : > { %v1280_v9 = vmul.f32 %v1274_v0, %v1993_v53  ;;  %v1281_v5 = vmul.f32 %v1277_v59, %v1999_v55  ;;  %v1373_v53 = vsel %vm644_vm7, %v2468_v47, %v1345_v19  ;;  %v1570_v44 = vunpack.c.0.s8 %v1569_v28 }
 0x3d2   : > { %v1299_v31 = vpop.permute.xlu0 %1298  ;;  %v1375_v61 = vsel %vm644_vm7, %v1279_v30, %v1355_v38  ;;  %vm1578_vm15 = vcmp.lt.s32.totalorder %v2734_v7, 512 }
 0x3d3   : > { %v1376_v57 = vsel %vm644_vm7, %v1280_v9, %v1356_v50  ;;  %v1301_v23 = vpop.permute.xlu1 %1300  ;;  %v1698_v46 = vpack.c.bf16 %v1375_v61, %v1371_v21  ;;  %v1377_v55 = vsel %vm644_vm7, %v1281_v5, %v1357_v60  ;;  %v1573_v51 = vsub.s32 %v1570_v44, %v2733_v40 }
 0x3d4   : > { %v1308_v4 = vsel %vm537_vm10, %v1299_v31, %v1301_v23  ;;  %v1706_v17 = vpack.c.bf16 %v1377_v55, %v1373_v53  ;;  %v1708_v29 = vpack.c.bf16 %v1376_v57, %v1372_v1 }
 0x3d5   : > { %1699 = vmatprep.subr.bf16.mxu0 %v1698_v46  ;;  %v1310_v26 = vmul.f32 %v1308_v4, %v2079_v33  ;;  %v1382_v33 = vld [vmem:[%s2691_s4] sm:$0x1] }
 0x3d6   : > { %v1303_v32 = vpop.permute.xlu0 %1302  ;;  %1701 = vmatpush1.bf16.msra.mxu0 %v1700_v10  ;;  %1707 = vmatprep.subr.bf16.mxu1 %v1706_v17 }
 0x3d7   : > { %v1307_v27 = vsel %vm537_vm10, %v1301_v23, %v1303_v32  ;;  %1709 = vmatpush1.bf16.msra.mxu1 %v1708_v29  ;;  %v1305_v58 = vpop.permute.xlu1 %1304  ;;  %v1378_v52 = vsel %vm644_vm7, %v1310_v26, 1.0 }
 0x3d8   : > { %v1311_v47 = vmul.f32 %v1307_v27, %v2082_v2  ;;  %v1306_v15 = vsel %vm537_vm10, %v1303_v32, %v1305_v58  ;;  %v1309_v49 = vsel %vm537_vm10, %v1305_v58, %v1299_v31 }
 0x3d9   : > { %v1312_v42 = vmul.f32 %v1306_v15, %v2085_v63  ;;  %v1313_v12 = vmul.f32 %v1309_v49, %v2088_v41 }
 0x3da   : > { %v1379_v25 = vsel %vm644_vm7, %v1311_v47, 1.0 }
 0x3db   : > { %v1380_v2 = vsel %vm644_vm7, %v1312_v42, 1.0  ;;  %1661 = vmatprep.subr.msk.mxu0 %vm1031_vm13, %v1379_v25  ;;  %v1381_v37 = vsel %vm644_vm7, %v1313_v12, 1.0 }
 0x3dc   : > { %1662 = vmatpush1.msk.msra.mxu0 %vm1031_vm13, %v1378_v52  ;;  %1664 = vmatprep.subr.msk.mxu1 %vm1031_vm13, %v1381_v37 }
 0x3dd   : > { %1663 = vmatmul.mubr.msk.f32.vlgmr.msra.gmra.mrb[4].mxu0 %vm1027_vm14, %v1382_v33  ;;  %1665 = vmatpush1.msk.msra.mxu1 %vm1031_vm13, %v1380_v2 }
 0x3de   : > { %1666 = vmatmul.mubr.msk.f32.vlgmr.msra.gmra.mrb[4].mxu1 %vm1027_vm14, %v1382_v33 }
 0x4b0   : > { %v1464_v24 = vpop.f32.mrb[4].mxu0 }
 0x4b1   : > { %1730 = vtanh.f32 %v1464_v24  ;;  %v1466_v41 = vpop.f32.mrb[5].mxu0  ;;  %v1535_v63 = vpop.f32.mrb[4].mxu1 }
 0x4b2   : > { %1732 = vtanh.f32 %v1466_v41  ;;  %v1537_v6 = vpop.f32.mrb[5].mxu1 }
 0x4b3   : > { %1734 = vtanh.f32 %v1535_v63 }
 0x4b4   : > { %1736 = vtanh.f32 %v1537_v6 }
 0x4bb   : > { %v1731_v8 = vpop.eup %1730 }
 0x4bc   : > { %v1733_v56 = vpop.eup %1732 }
 0x4bd   : > { %v1735_v43 = vpop.eup %1734  ;;  %v1548_v14 = vcombine.low %v1731_v8, %v1733_v56 }
 0x4be   : > { %v1737_v35 = vpop.eup %1736 }
 0x4bf   : > { %v1556_v54 = vrot.slane %v1548_v14, %v2732_v20  ;;  %v1549_v18 = vcombine.low %v1735_v43, %v1737_v35 }
 0x4c1   : > { %v1563_v22 = vrot.slane %v1549_v18, %v2732_v20 }
 0x4c3   : > { %v1564_v48 = vcombine.low %v1556_v54, %v1563_v22 }
 0x4c5   : > { %v1566_v3 = vadd.f32 %v1738_v39, %v1564_v48 }
 0x4c7   : > { %v1574_v62 = vrot.slane %v1566_v3, %v1573_v51 }
 0x4c9   : > { %1580 = vst.msk [vmem:[%s222_s29] sm:$0xf] %vm1578_vm15, %v1574_v62 }
 0x4ca PF: > { %s15_s18 = sadd.s32 1, %s1745_s18  }
 0x4cb   : > { %p12_p4 = scmp.ge.s32.totalorder %s15_s18, 4  }
 0x4cd   :  { %14 = sbr.rel (!%p12_p4) target bundleno = 1 (0x1), region = 77 }

</bundles_post_ra>
